<compile_context>
chip_gen: v6e
topology: v6e:2x2x1
jax: 0.10.0
libtpu: 0.0.40
codegen_flags: <defaults>
</compile_context>

<pallas_src>
import functools

import jax
import jax.numpy as jnp
from jax.experimental import pallas as pl
from jax.experimental.pallas import tpu as pltpu

D_IN, H1, H2, D_OUT = 1024, 256, 128, 64
D_OUT_PAD = 128  # lane-dense padded output width (multiple of 128)


def mlp_kernel(x_ref, w1_ref, b1_ref, w2_ref, b2_ref, w3_ref, b3_ref, o_ref,
               *, compute_dtype):
    # fc1 + relu  (compute_dtype operands on the MXU, f32 accumulation)
    x = x_ref[...].astype(compute_dtype)
    h = jnp.dot(x, w1_ref[...].astype(compute_dtype),
                preferred_element_type=jnp.float32)
    h = jnp.maximum(h + b1_ref[...].astype(jnp.float32), 0.0)
    # dropout (eval mode) -> identity
    # fc2 + relu
    h = jnp.dot(h.astype(compute_dtype), w2_ref[...].astype(compute_dtype),
                preferred_element_type=jnp.float32)
    h = jnp.maximum(h + b2_ref[...].astype(jnp.float32), 0.0)
    # fc3 (no activation), output padded to 128 lanes for full-width stores
    out = jnp.dot(h.astype(compute_dtype), w3_ref[...].astype(compute_dtype),
                  preferred_element_type=jnp.float32)
    o_ref[...] = (out + b3_ref[...].astype(jnp.float32)).astype(o_ref.dtype)


def _round_up(n, m):
    return ((n + m - 1) // m) * m


def prepare_params(params, *, param_dtype=None):
    """One-time weight preprocessing (hoisted out of the forward call).

    Pads fc3 to a lane-dense 128-wide output and optionally pre-casts the
    weight matrices (e.g. to bf16 to halve weight HBM traffic).  Biases stay
    f32 (added after the f32 accumulation).
    """
    w3p = jnp.pad(params["w3"], ((0, 0), (0, D_OUT_PAD - D_OUT)))
    b3p = jnp.pad(params["b3"], ((0, 0), (0, D_OUT_PAD - D_OUT)))
    w1, w2 = params["w1"], params["w2"]
    if param_dtype is not None:
        w1, w2, w3p = (w.astype(param_dtype) for w in (w1, w2, w3p))
    return {"w1": w1, "b1": params["b1"],
            "w2": w2, "b2": params["b2"],
            "w3p": w3p, "b3p": b3p}


def downstream_task_forward(x, prepared, *, tile_b=512,
                            compute_dtype=jnp.bfloat16):
    """x: [B, 1024] float32. prepared: output of prepare_params().

    compute_dtype: MXU operand dtype (bf16 default = HBM-bound fast path;
    jnp.float32 for exact parity with the f32 PyTorch reference).
    """
    B = x.shape[0]

    # Batch tile selection:
    #   * B <= 128: one full-batch step (block dim == array dim).
    #   * 128 < B <= 2*tile_b: force >= 2 grid steps so ("parallel",) shards
    #     across v7x's two TensorCores.
    #   * large B: tile_b rows per step (multiple of 128; full MXU rows).
    if B <= 128:
        tb = B
    elif B <= 2 * tile_b:
        tb = max(128, _round_up(pl.cdiv(B, 2), 128))
    else:
        tb = tile_b
    # No jnp.pad of x: Pallas handles the partial last block; the masked
    # writeback plus row-independence make out-of-range rows harmless.
    n_steps = pl.cdiv(B, tb)

    # Weights/biases are small and grid-invariant: constant index map means
    # they are DMA'd once and reused across all grid steps.
    # (pl.Buffered(1) on these would save ~1 MiB of dead second buffers; left
    #  at the default for portability.)
    rep2 = lambda i: (0, 0)

    out_padded = pl.pallas_call(
        functools.partial(mlp_kernel, compute_dtype=compute_dtype),
        out_shape=jax.ShapeDtypeStruct((B, D_OUT_PAD), jnp.float32),
        grid_spec=pltpu.PrefetchScalarGridSpec(
            num_scalar_prefetch=0,
            grid=(n_steps,),
            in_specs=[
                pl.BlockSpec((tb, D_IN), lambda i: (i, 0)),   # x tile
                pl.BlockSpec((D_IN, H1), rep2),               # w1
                pl.BlockSpec((1, H1), rep2),                  # b1
                pl.BlockSpec((H1, H2), rep2),                 # w2
                pl.BlockSpec((1, H2), rep2),                  # b2
                pl.BlockSpec((H2, D_OUT_PAD), rep2),          # w3 (padded)
                pl.BlockSpec((1, D_OUT_PAD), rep2),           # b3 (padded)
            ],
            out_specs=pl.BlockSpec((tb, D_OUT_PAD), lambda i: (i, 0)),
        ),
        compiler_params=pltpu.CompilerParams(
            dimension_semantics=("parallel",),   # shards steps across v7x TCs
        ),
    )(x, prepared["w1"], prepared["b1"], prepared["w2"], prepared["b2"],
      prepared["w3p"], prepared["b3p"])

    # Second-order cost: column slice back to the module's 64-wide output.
    return out_padded[:, :D_OUT]


def init_params(key):
    """Deterministic init matching nn.Linear shapes (stored transposed)."""
    ks = jax.random.split(key, 6)

    def linear(kw, kb, fan_in, fan_out):
        bound = 1.0 / jnp.sqrt(fan_in)
        w = jax.random.uniform(kw, (fan_in, fan_out), jnp.float32, -bound, bound)
        b = jax.random.uniform(kb, (1, fan_out), jnp.float32, -bound, bound)
        return w, b

    w1, b1 = linear(ks[0], ks[1], D_IN, H1)
    w2, b2 = linear(ks[2], ks[3], H1, H2)
    w3, b3 = linear(ks[4], ks[5], H2, D_OUT)
    return {"w1": w1, "b1": b1, "w2": w2, "b2": b2, "w3": w3, "b3": b3}


def reference_forward(x, p):
    h = jnp.maximum(x @ p["w1"] + p["b1"], 0.0)
    h = jnp.maximum(h @ p["w2"] + p["b2"], 0.0)
    return h @ p["w3"] + p["b3"]


if __name__ == "__main__":
    key = jax.random.PRNGKey(0)
    k_params, k_x1, k_x2 = jax.random.split(key, 3)

    params = init_params(k_params)
    prep_f32 = prepare_params(params)                              # exact path
    prep_bf16 = prepare_params(params, param_dtype=jnp.bfloat16)   # fast path

    # 1) Small batch, single grid step, f32 compute: exact vs reference.
    B_small = 8
    x_small = jax.random.normal(k_x1, (B_small, D_IN), dtype=jnp.float32)
    out_small = jax.block_until_ready(
        downstream_task_forward(x_small, prep_f32, compute_dtype=jnp.float32))
    ref_small = reference_forward(x_small, params)
    assert out_small.shape == (B_small, D_OUT)
    assert jnp.allclose(out_small, ref_small, atol=1e-4, rtol=1e-4), \
        "mismatch vs reference (small batch, f32)"

    # 2) Medium batch, >=2 grid steps with a partial last block, f32 compute.
    B_big = 300
    x_big = jax.random.normal(k_x2, (B_big, D_IN), dtype=jnp.float32)
    out_big = jax.block_until_ready(
        downstream_task_forward(x_big, prep_f32, compute_dtype=jnp.float32))
    ref_big = reference_forward(x_big, params)
    assert out_big.shape == (B_big, D_OUT)
    assert jnp.allclose(out_big, ref_big, atol=1e-4, rtol=1e-4), \
        "mismatch vs reference (tiled batch, f32)"

    # 3) Same batch on the default bf16 fast path (bf16 weights + operands,
    #    f32 accumulation): looser tolerance due to bf16 input rounding.
    out_fast = jax.block_until_ready(
        downstream_task_forward(x_big, prep_bf16))
    assert out_fast.shape == (B_big, D_OUT)
    assert jnp.allclose(out_fast, ref_big, atol=5e-2, rtol=5e-2), \
        "mismatch vs reference (tiled batch, bf16 fast path)"

    print("KERNEL_OK")
</pallas_src>

<mosaic_0001>
module attributes {stable_mosaic.version = 11 : i64} {
  func.func @mlp_kernel(%arg0: i32, %arg1: memref<8x1024xf32, #tpu.memory_space<vmem>>, %arg2: memref<1024x256xf32, #tpu.memory_space<vmem>>, %arg3: memref<1x256xf32, #tpu.memory_space<vmem>>, %arg4: memref<256x128xf32, #tpu.memory_space<vmem>>, %arg5: memref<1x128xf32, #tpu.memory_space<vmem>>, %arg6: memref<128x128xf32, #tpu.memory_space<vmem>>, %arg7: memref<1x128xf32, #tpu.memory_space<vmem>>, %arg8: memref<8x128xf32, #tpu.memory_space<vmem>>) attributes {dimension_semantics = [#tpu.dimension_semantics<parallel>], iteration_bounds = array<i64: 1>, scalar_prefetch = 0 : i64, scratch_operands = 0 : i64, tpu.core_type = #tpu.core_type<tc>, window_params = [{transform_indices = @transform_0, window_bounds = array<i64: 8, 1024>}, {pipeline_mode = #tpu.pipeline_mode<synchronous>, transform_indices = @transform_1, window_bounds = array<i64: 1024, 256>}, {pipeline_mode = #tpu.pipeline_mode<synchronous>, transform_indices = @transform_2, window_bounds = array<i64: 1, 256>}, {pipeline_mode = #tpu.pipeline_mode<synchronous>, transform_indices = @transform_3, window_bounds = array<i64: 256, 128>}, {pipeline_mode = #tpu.pipeline_mode<synchronous>, transform_indices = @transform_4, window_bounds = array<i64: 1, 128>}, {pipeline_mode = #tpu.pipeline_mode<synchronous>, transform_indices = @transform_5, window_bounds = array<i64: 128, 128>}, {pipeline_mode = #tpu.pipeline_mode<synchronous>, transform_indices = @transform_6, window_bounds = array<i64: 1, 128>}, {transform_indices = @transform_7, window_bounds = array<i64: 8, 128>}]} {
    %c0 = arith.constant 0 : index
    %c0_0 = arith.constant 0 : index
    %0 = vector.load %arg1[%c0, %c0_0] : memref<8x1024xf32, #tpu.memory_space<vmem>>, vector<8x1024xf32>
    %c0_1 = arith.constant 0 : index
    %c0_2 = arith.constant 0 : index
    %1 = vector.load %arg2[%c0_1, %c0_2] : memref<1024x256xf32, #tpu.memory_space<vmem>>, vector<1024x256xf32>
    %cst = arith.constant dense<0.000000e+00> : vector<8x256xf32>
    %2 = tpu.matmul %0, %1, %cst {dimension_numbers = #tpu.dot_dimension_numbers<[1], [0], [0], [1], [0, 0, 1, 1], [], []>} : vector<8x1024xf32>, vector<1024x256xf32>, vector<8x256xf32> -> vector<8x256xf32>
    %c0_3 = arith.constant 0 : index
    %c0_4 = arith.constant 0 : index
    %3 = vector.load %arg3[%c0_3, %c0_4] : memref<1x256xf32, #tpu.memory_space<vmem>>, vector<1x256xf32>
    %4 = vector.broadcast %3 : vector<1x256xf32> to vector<8x256xf32>
    %5 = arith.addf %2, %4 : vector<8x256xf32>
    %cst_5 = arith.constant 0.000000e+00 : f32
    %6 = vector.broadcast %cst_5 : f32 to vector<8x256xf32>
    %7 = arith.maximumf %5, %6 : vector<8x256xf32>
    %c0_6 = arith.constant 0 : index
    %c0_7 = arith.constant 0 : index
    %8 = vector.load %arg4[%c0_6, %c0_7] : memref<256x128xf32, #tpu.memory_space<vmem>>, vector<256x128xf32>
    %cst_8 = arith.constant dense<0.000000e+00> : vector<8x128xf32>
    %9 = tpu.matmul %7, %8, %cst_8 {dimension_numbers = #tpu.dot_dimension_numbers<[1], [0], [0], [1], [0, 0, 1, 1], [], []>} : vector<8x256xf32>, vector<256x128xf32>, vector<8x128xf32> -> vector<8x128xf32>
    %c0_9 = arith.constant 0 : index
    %c0_10 = arith.constant 0 : index
    %10 = vector.load %arg5[%c0_9, %c0_10] : memref<1x128xf32, #tpu.memory_space<vmem>>, vector<1x128xf32>
    %11 = vector.broadcast %10 : vector<1x128xf32> to vector<8x128xf32>
    %12 = arith.addf %9, %11 : vector<8x128xf32>
    %cst_11 = arith.constant 0.000000e+00 : f32
    %13 = vector.broadcast %cst_11 : f32 to vector<8x128xf32>
    %14 = arith.maximumf %12, %13 : vector<8x128xf32>
    %c0_12 = arith.constant 0 : index
    %c0_13 = arith.constant 0 : index
    %15 = vector.load %arg6[%c0_12, %c0_13] : memref<128x128xf32, #tpu.memory_space<vmem>>, vector<128x128xf32>
    %cst_14 = arith.constant dense<0.000000e+00> : vector<8x128xf32>
    %16 = tpu.matmul %14, %15, %cst_14 {dimension_numbers = #tpu.dot_dimension_numbers<[1], [0], [0], [1], [0, 0, 1, 1], [], []>} : vector<8x128xf32>, vector<128x128xf32>, vector<8x128xf32> -> vector<8x128xf32>
    %c0_15 = arith.constant 0 : index
    %c0_16 = arith.constant 0 : index
    %17 = vector.load %arg7[%c0_15, %c0_16] : memref<1x128xf32, #tpu.memory_space<vmem>>, vector<1x128xf32>
    %18 = vector.broadcast %17 : vector<1x128xf32> to vector<8x128xf32>
    %19 = arith.addf %16, %18 : vector<8x128xf32>
    %c0_17 = arith.constant 0 : index
    %c0_18 = arith.constant 0 : index
    %20 = vector.load %arg8[%c0_17, %c0_18] : memref<8x128xf32, #tpu.memory_space<vmem>>, vector<8x128xf32>
    tpu.vector_store %arg8[%c0_17, %c0_18], %19 {strides = array<i32>} : memref<8x128xf32, #tpu.memory_space<vmem>>, vector<8x128xf32>,
    return
  }
  func.func @transform_0(%arg0: i32) -> (i32, i32) {
    %c0_i32 = arith.constant 0 : i32
    %c0_i32_0 = arith.constant 0 : i32
    return %arg0, %c0_i32 : i32, i32
  }
  func.func @transform_1(%arg0: i32) -> (i32, i32) {
    %c0_i32 = arith.constant 0 : i32
    %c0_i32_0 = arith.constant 0 : i32
    %c0_i32_1 = arith.constant 0 : i32
    return %c0_i32, %c0_i32_0 : i32, i32
  }
  func.func @transform_2(%arg0: i32) -> (i32, i32) {
    %c0_i32 = arith.constant 0 : i32
    %c0_i32_0 = arith.constant 0 : i32
    %c0_i32_1 = arith.constant 0 : i32
    return %c0_i32, %c0_i32_0 : i32, i32
  }
  func.func @transform_3(%arg0: i32) -> (i32, i32) {
    %c0_i32 = arith.constant 0 : i32
    %c0_i32_0 = arith.constant 0 : i32
    %c0_i32_1 = arith.constant 0 : i32
    return %c0_i32, %c0_i32_0 : i32, i32
  }
  func.func @transform_4(%arg0: i32) -> (i32, i32) {
    %c0_i32 = arith.constant 0 : i32
    %c0_i32_0 = arith.constant 0 : i32
    %c0_i32_1 = arith.constant 0 : i32
    return %c0_i32, %c0_i32_0 : i32, i32
  }
  func.func @transform_5(%arg0: i32) -> (i32, i32) {
    %c0_i32 = arith.constant 0 : i32
    %c0_i32_0 = arith.constant 0 : i32
    %c0_i32_1 = arith.constant 0 : i32
    return %c0_i32, %c0_i32_0 : i32, i32
  }
  func.func @transform_6(%arg0: i32) -> (i32, i32) {
    %c0_i32 = arith.constant 0 : i32
    %c0_i32_0 = arith.constant 0 : i32
    %c0_i32_1 = arith.constant 0 : i32
    return %c0_i32, %c0_i32_0 : i32, i32
  }
  func.func @transform_7(%arg0: i32) -> (i32, i32) {
    %c0_i32 = arith.constant 0 : i32
    %c0_i32_0 = arith.constant 0 : i32
    return %arg0, %c0_i32 : i32, i32
  }
}

</mosaic_0001>

<bundles_post_ra>
// kernel: tpu_custom_call.1
= control target key start
LH: loop header
LB: loop body
LE: loop exit
PB: predicated region body
PF: predicated region fallthrough
CT: control target
= control target key end

     0   :  { %12 = vsyncpa [#allocation3], 0  ;;  %s1163_s0 = inlined_call_operand.hbm [shape: f32[8,1024], index: 0, kind: input, shape index: {}]   ;;  %s1164_s1 = inlined_call_operand.hbm [shape: f32[1024,256], index: 1, kind: input, shape index: {}]   ;;  %s1165_s2 = inlined_call_operand.vmem [shape: f32[1,256], index: 2, kind: input, shape index: {}]   ;;  %s1166_s3 = inlined_call_operand.hbm [shape: f32[256,128], index: 3, kind: input, shape index: {}]   ;;  %s1167_s4 = inlined_call_operand.vmem [shape: f32[1,128], index: 4, kind: input, shape index: {}]   ;;  %s1168_s5 = inlined_call_operand.hbm [shape: f32[128,128], index: 5, kind: input, shape index: {}]   ;;  %s1169_s6 = inlined_call_operand.vmem [shape: f32[1,128], index: 6, kind: input, shape index: {}]   ;;  %s1170_s7 = inlined_call_operand.hbm [shape: f32[8,128], index: 7, kind: output, shape index: {}]  }
   0x1   :  { %13 = vsyncpa [#allocation6], 0 }
   0x2   :  { %14 = vsyncpa [#allocation9], 0 }
   0x3   :  { %15 = vsyncpa [#allocation4], 0  ;;  %s1071_s24 = smov [#allocation5]  }
   0x4   :  { %s31_s25 = sshll.u32 %s1071_s24, 4  ;;  %s32_s25 = int_to_ptr.vmem [resolvable:$true] %s31_s25 }
   0x5   :  { %s971_s26 = scalar_lea.vmem %s32_s25, 32768  ;;  %p976_p1 = scmp.lt.s32.totalorder %s32_s25, %s32_s25 }
   0x6   :  { %p972_p0 = scmp.ne.s32.totalorder %s32_s25, %s971_s26  ;;  %p977_p2 = scmp.lt.s32.totalorder %s971_s26, %s971_s26 }
   0x8   :  { %p978_p3 = por %p977_p2, %p976_p1 }
   0xa   :  { %p979_p4 = pnand %p978_p3, %p972_p0 }
   0xc   :  { %982 = shalt.err (!%p979_p4)
}
   0xd   :  { %s1072_s27 = smov 256   ;;  %s1073_s28 = smov 16  }
   0xe   :  { %37 = dma.hbm_to_vmem [thread:$0]  %s1164_s1, 32768, %s32_s25, [#allocation6], %s1072_s27, %s1072_s27, %s1073_s28  }
   0xf   :  { %s1074_s8 = smov [#allocation2]   ;;  %s1075_s10 = smov [#allocation7]  }
  0x10   :  { %s22_s9 = sshll.u32 %s1074_s8, 4  ;;  %s45_s11 = sshll.u32 %s1075_s10, 4  ;;  %s23_s9 = int_to_ptr.vmem [resolvable:$true] %s22_s9  ;;  %s46_s11 = int_to_ptr.vmem [resolvable:$true] %s45_s11 }
  0x11   :  { %s991_s12 = scalar_lea.vmem %s23_s9, 1024  ;;  %p996_p6 = scmp.lt.s32.totalorder %s23_s9, %s23_s9 }
  0x12   :  { %p992_p5 = scmp.ne.s32.totalorder %s23_s9, %s991_s12  ;;  %p997_p7 = scmp.lt.s32.totalorder %s991_s12, %s991_s12 }
  0x14   :  { %p998_p8 = por %p997_p7, %p996_p6 }
  0x16   :  { %p999_p9 = pnand %p998_p8, %p992_p5 }
  0x18   :  { %1002 = shalt.err (!%p999_p9)
}
  0x19   :  { %25 = dma.hbm_to_vmem [thread:$0]  %s1163_s0, 1024, %s23_s9, [#allocation3]  }
  0x1a   :  { %s1011_s15 = scalar_lea.vmem %s46_s11, 4096  ;;  %p1016_p11 = scmp.lt.s32.totalorder %s46_s11, %s46_s11 }
  0x1b   :  { %p1012_p10 = scmp.ne.s32.totalorder %s46_s11, %s1011_s15  ;;  %p1017_p12 = scmp.lt.s32.totalorder %s1011_s15, %s1011_s15 }
  0x1d   :  { %p1018_p13 = por %p1017_p12, %p1016_p11 }
  0x1f   :  { %p1019_p0 = pnand %p1018_p13, %p1012_p10 }
  0x21   :  { %1022 = shalt.err (!%p1019_p0)
}
  0x22   :  { %s1076_s1 = smov 128   ;;  %s1077_s16 = smov 8  }
  0x23   :  { %51 = dma.hbm_to_vmem [thread:$0]  %s1166_s3, 4096, %s46_s11, [#allocation6], %s1076_s1, %s1076_s1, %s1077_s16  }
  0x24   :  { %s1078_s19 = smov [#allocation8]  }
  0x25   :  { %s59_s20 = sshll.u32 %s1078_s19, 4  ;;  %s60_s20 = int_to_ptr.vmem [resolvable:$true] %s59_s20 }
  0x26   :  { %s1031_s21 = scalar_lea.vmem %s60_s20, 2048  ;;  %p1036_p2 = scmp.lt.s32.totalorder %s60_s20, %s60_s20 }
  0x27   :  { %p1032_p1 = scmp.ne.s32.totalorder %s60_s20, %s1031_s21  ;;  %p1037_p3 = scmp.lt.s32.totalorder %s1031_s21, %s1031_s21 }
  0x29   :  { %p1038_p4 = por %p1037_p3, %p1036_p2 }
  0x2b   :  { %p1039_p5 = pnand %p1038_p4, %p1032_p1 }
  0x2d   :  { %1042 = shalt.err (!%p1039_p5)
}
  0x2e   :  { %65 = dma.hbm_to_vmem [thread:$0]  %s1168_s5, 2048, %s60_s20, [#allocation9], %s1076_s1, %s1076_s1, %s1077_s16  }
  0x2f   :  { %1063 = dma.done.wait [#allocation3], 1024  }
  0x30   :  { %1064 = vsyncadd [#allocation3], 4294966272 }
  0x31   :  { %1065 = dma.done.wait [#allocation6], 36864  }
  0x32   :  { %1066 = vsyncadd [#allocation6], 4294930432 }
  0x33   :  { %1067 = dma.done.wait [#allocation9], 2048  }
  0x34   :  { %1068 = vsyncadd [#allocation9], 4294965248  ;;  %v119_v0 = vld [vmem:[#allocation5 + $0xf8] sm:$0xff]  ;;  %v118_v2 = vld [vmem:[#allocation5 + $0xf0] sm:$0xff]  ;;  %vm1080_vm0 = vmmov 0   ;;  %s1081_s26 = smov [#allocation10]  }
  0x35   :  { %v183_v1 = vld [vmem:[#allocation5 + $0x2f8] sm:$0xff]  ;;  %356 = vmatprep.subr.mxu0 %v119_v0  ;;  %v182_v3 = vld [vmem:[#allocation5 + $0x2f0] sm:$0xff]  ;;  %v117_v4 = vld [vmem:[#allocation5 + $0xe8] sm:$0xff]  ;;  %s852_s27 = sshll.u32 %s1081_s26, 4  ;;  %s853_s27 = int_to_ptr.vmem [resolvable:$true] %s852_s27 }
  0x36   :  { %427 = vmatprep.subr.mxu1 %v183_v1  ;;  %v181_v5 = vld [vmem:[#allocation5 + $0x2e8] sm:$0xff]  ;;  %357 = vmatpush1.msra.mxu0 %v118_v2  ;;  %v116_v6 = vld [vmem:[#allocation5 + $0xe0] sm:$0xff]  ;;  %v115_v8 = vld [vmem:[#allocation5 + $0xd8] sm:$0xff]  ;;  %s1043_s28 = scalar_lea.vmem %s853_s27, 128  ;;  %p1048_p7 = scmp.lt.s32.totalorder %s853_s27, %s853_s27 }
  0x37   :  { %428 = vmatpush1.msra.mxu1 %v182_v3  ;;  %v180_v7 = vld [vmem:[#allocation5 + $0x2e0] sm:$0xff]  ;;  %358 = vmatprep.subr.mxu0 %v117_v4  ;;  %v179_v9 = vld [vmem:[#allocation5 + $0x2d8] sm:$0xff]  ;;  %v114_v10 = vld [vmem:[#allocation5 + $0xd0] sm:$0xff]  ;;  %p1044_p6 = scmp.ne.s32.totalorder %s853_s27, %s1043_s28  ;;  %p1049_p8 = scmp.lt.s32.totalorder %s1043_s28, %s1043_s28 }
  0x38   :  { %429 = vmatprep.subr.mxu1 %v181_v5  ;;  %v178_v11 = vld [vmem:[#allocation5 + $0x2d0] sm:$0xff]  ;;  %359 = vmatpush1.msra.mxu0 %v116_v6  ;;  %v113_v12 = vld [vmem:[#allocation5 + $0xc8] sm:$0xff]  ;;  %v112_v14 = vld [vmem:[#allocation5 + $0xc0] sm:$0xff] }
  0x39   :  { %430 = vmatpush1.msra.mxu1 %v180_v7  ;;  %v177_v13 = vld [vmem:[#allocation5 + $0x2c8] sm:$0xff]  ;;  %360 = vmatprep.subr.mxu0 %v115_v8  ;;  %v176_v15 = vld [vmem:[#allocation5 + $0x2c0] sm:$0xff]  ;;  %v111_v16 = vld [vmem:[#allocation5 + $0xb8] sm:$0xff]  ;;  %p1050_p9 = por %p1049_p8, %p1048_p7 }
  0x3a   :  { %431 = vmatprep.subr.mxu1 %v179_v9  ;;  %361 = vmatpush1.msra.mxu0 %v114_v10  ;;  %v175_v17 = vld [vmem:[#allocation5 + $0x2b8] sm:$0xff]  ;;  %v110_v18 = vld [vmem:[#allocation5 + $0xb0] sm:$0xff]  ;;  %v109_v20 = vld [vmem:[#allocation5 + $0xa8] sm:$0xff] }
  0x3b   :  { %432 = vmatpush1.msra.mxu1 %v178_v11  ;;  %362 = vmatprep.subr.mxu0 %v113_v12  ;;  %v174_v19 = vld [vmem:[#allocation5 + $0x2b0] sm:$0xff]  ;;  %v173_v21 = vld [vmem:[#allocation5 + $0x2a8] sm:$0xff]  ;;  %v108_v22 = vld [vmem:[#allocation5 + $0xa0] sm:$0xff]  ;;  %p1051_p10 = pnand %p1050_p9, %p1044_p6 }
  0x3c   :  { %433 = vmatprep.subr.mxu1 %v177_v13  ;;  %363 = vmatpush1.msra.mxu0 %v112_v14  ;;  %v172_v23 = vld [vmem:[#allocation5 + $0x2a0] sm:$0xff]  ;;  %v107_v24 = vld [vmem:[#allocation5 + $0x98] sm:$0xff]  ;;  %v106_v26 = vld [vmem:[#allocation5 + $0x90] sm:$0xff] }
  0x3d   :  { %434 = vmatpush1.msra.mxu1 %v176_v15  ;;  %364 = vmatprep.subr.mxu0 %v111_v16  ;;  %v171_v25 = vld [vmem:[#allocation5 + $0x298] sm:$0xff]  ;;  %v170_v27 = vld [vmem:[#allocation5 + $0x290] sm:$0xff]  ;;  %v105_v28 = vld [vmem:[#allocation5 + $0x88] sm:$0xff] }
  0x3e   :  { %435 = vmatprep.subr.mxu1 %v175_v17  ;;  %365 = vmatpush1.msra.mxu0 %v110_v18  ;;  %v169_v29 = vld [vmem:[#allocation5 + $0x288] sm:$0xff]  ;;  %v104_v30 = vld [vmem:[#allocation5 + $0x80] sm:$0xff]  ;;  %v103_v32 = vld [vmem:[#allocation5 + $0x78] sm:$0xff] }
  0x3f   :  { %436 = vmatpush1.msra.mxu1 %v174_v19  ;;  %366 = vmatprep.subr.mxu0 %v109_v20  ;;  %v168_v31 = vld [vmem:[#allocation5 + $0x280] sm:$0xff]  ;;  %v167_v33 = vld [vmem:[#allocation5 + $0x278] sm:$0xff]  ;;  %v102_v34 = vld [vmem:[#allocation5 + $0x70] sm:$0xff] }
  0x40   :  { %437 = vmatprep.subr.mxu1 %v173_v21  ;;  %367 = vmatpush1.msra.mxu0 %v108_v22  ;;  %v166_v35 = vld [vmem:[#allocation5 + $0x270] sm:$0xff]  ;;  %v101_v36 = vld [vmem:[#allocation5 + $0x68] sm:$0xff]  ;;  %v100_v38 = vld [vmem:[#allocation5 + $0x60] sm:$0xff] }
  0x41   :  { %438 = vmatpush1.msra.mxu1 %v172_v23  ;;  %368 = vmatprep.subr.mxu0 %v107_v24  ;;  %v165_v37 = vld [vmem:[#allocation5 + $0x268] sm:$0xff]  ;;  %v164_v39 = vld [vmem:[#allocation5 + $0x260] sm:$0xff]  ;;  %v99_v40 = vld [vmem:[#allocation5 + $0x58] sm:$0xff] }
  0x42   :  { %439 = vmatprep.subr.mxu1 %v171_v25  ;;  %369 = vmatpush1.msra.mxu0 %v106_v26  ;;  %v163_v41 = vld [vmem:[#allocation5 + $0x258] sm:$0xff]  ;;  %v98_v42 = vld [vmem:[#allocation5 + $0x50] sm:$0xff]  ;;  %v97_v44 = vld [vmem:[#allocation5 + $0x48] sm:$0xff] }
  0x43   :  { %440 = vmatpush1.msra.mxu1 %v170_v27  ;;  %370 = vmatprep.subr.mxu0 %v105_v28  ;;  %v162_v43 = vld [vmem:[#allocation5 + $0x250] sm:$0xff]  ;;  %v161_v45 = vld [vmem:[#allocation5 + $0x248] sm:$0xff]  ;;  %v96_v46 = vld [vmem:[#allocation5 + $0x40] sm:$0xff] }
  0x44   :  { %441 = vmatprep.subr.mxu1 %v169_v29  ;;  %371 = vmatpush1.msra.mxu0 %v104_v30  ;;  %v160_v47 = vld [vmem:[#allocation5 + $0x240] sm:$0xff]  ;;  %v95_v48 = vld [vmem:[#allocation5 + $0x38] sm:$0xff]  ;;  %v94_v50 = vld [vmem:[#allocation5 + $0x30] sm:$0xff] }
  0x45   :  { %442 = vmatpush1.msra.mxu1 %v168_v31  ;;  %372 = vmatprep.subr.mxu0 %v103_v32  ;;  %v159_v49 = vld [vmem:[#allocation5 + $0x238] sm:$0xff]  ;;  %v158_v51 = vld [vmem:[#allocation5 + $0x230] sm:$0xff]  ;;  %v93_v52 = vld [vmem:[#allocation5 + $0x28] sm:$0xff] }
  0x46   :  { %443 = vmatprep.subr.mxu1 %v167_v33  ;;  %373 = vmatpush1.msra.mxu0 %v102_v34  ;;  %v157_v53 = vld [vmem:[#allocation5 + $0x228] sm:$0xff]  ;;  %v92_v54 = vld [vmem:[#allocation5 + $0x20] sm:$0xff]  ;;  %v91_v56 = vld [vmem:[#allocation5 + $0x18] sm:$0xff] }
  0x47   :  { %444 = vmatpush1.msra.mxu1 %v166_v35  ;;  %374 = vmatprep.subr.mxu0 %v101_v36  ;;  %v156_v55 = vld [vmem:[#allocation5 + $0x220] sm:$0xff]  ;;  %v155_v57 = vld [vmem:[#allocation5 + $0x218] sm:$0xff]  ;;  %v90_v58 = vld [vmem:[#allocation5 + $0x10] sm:$0xff] }
  0x48   :  { %445 = vmatprep.subr.mxu1 %v165_v37  ;;  %375 = vmatpush1.msra.mxu0 %v100_v38  ;;  %v154_v59 = vld [vmem:[#allocation5 + $0x210] sm:$0xff]  ;;  %v89_v60 = vld [vmem:[#allocation5 + $0x8] sm:$0xff]  ;;  %v88_v62 = vld [vmem:[#allocation5] sm:$0xff] }
  0x49   :  { %446 = vmatpush1.msra.mxu1 %v164_v39  ;;  %376 = vmatprep.subr.mxu0 %v99_v40  ;;  %v153_v61 = vld [vmem:[#allocation5 + $0x208] sm:$0xff]  ;;  %v152_v63 = vld [vmem:[#allocation5 + $0x200] sm:$0xff]  ;;  %v151_v0 = vld [vmem:[#allocation5 + $0x1f8] sm:$0xff] }
  0x4a   :  { %447 = vmatprep.subr.mxu1 %v163_v41  ;;  %377 = vmatpush1.msra.mxu0 %v98_v42  ;;  %v215_v1 = vld [vmem:[#allocation5 + $0x3f8] sm:$0xff]  ;;  %v150_v2 = vld [vmem:[#allocation5 + $0x1f0] sm:$0xff]  ;;  %v149_v4 = vld [vmem:[#allocation5 + $0x1e8] sm:$0xff] }
  0x4b   :  { %448 = vmatpush1.msra.mxu1 %v162_v43  ;;  %378 = vmatprep.subr.mxu0 %v97_v44  ;;  %v214_v3 = vld [vmem:[#allocation5 + $0x3f0] sm:$0xff]  ;;  %v213_v5 = vld [vmem:[#allocation5 + $0x3e8] sm:$0xff]  ;;  %v148_v6 = vld [vmem:[#allocation5 + $0x1e0] sm:$0xff] }
  0x4c   :  { %449 = vmatprep.subr.mxu1 %v161_v45  ;;  %379 = vmatpush1.msra.mxu0 %v96_v46  ;;  %v212_v7 = vld [vmem:[#allocation5 + $0x3e0] sm:$0xff]  ;;  %v147_v8 = vld [vmem:[#allocation5 + $0x1d8] sm:$0xff]  ;;  %v146_v10 = vld [vmem:[#allocation5 + $0x1d0] sm:$0xff] }
  0x4d   :  { %450 = vmatpush1.msra.mxu1 %v160_v47  ;;  %380 = vmatprep.subr.mxu0 %v95_v48  ;;  %v211_v9 = vld [vmem:[#allocation5 + $0x3d8] sm:$0xff]  ;;  %v210_v11 = vld [vmem:[#allocation5 + $0x3d0] sm:$0xff]  ;;  %v145_v12 = vld [vmem:[#allocation5 + $0x1c8] sm:$0xff] }
  0x4e   :  { %451 = vmatprep.subr.mxu1 %v159_v49  ;;  %381 = vmatpush1.msra.mxu0 %v94_v50  ;;  %v209_v13 = vld [vmem:[#allocation5 + $0x3c8] sm:$0xff]  ;;  %v144_v14 = vld [vmem:[#allocation5 + $0x1c0] sm:$0xff]  ;;  %v143_v16 = vld [vmem:[#allocation5 + $0x1b8] sm:$0xff] }
  0x4f   :  { %452 = vmatpush1.msra.mxu1 %v158_v51  ;;  %382 = vmatprep.subr.mxu0 %v93_v52  ;;  %v208_v15 = vld [vmem:[#allocation5 + $0x3c0] sm:$0xff]  ;;  %v207_v17 = vld [vmem:[#allocation5 + $0x3b8] sm:$0xff]  ;;  %v142_v18 = vld [vmem:[#allocation5 + $0x1b0] sm:$0xff] }
  0x50   :  { %453 = vmatprep.subr.mxu1 %v157_v53  ;;  %383 = vmatpush1.msra.mxu0 %v92_v54  ;;  %v206_v19 = vld [vmem:[#allocation5 + $0x3b0] sm:$0xff]  ;;  %v141_v20 = vld [vmem:[#allocation5 + $0x1a8] sm:$0xff]  ;;  %v140_v22 = vld [vmem:[#allocation5 + $0x1a0] sm:$0xff] }
  0x51   :  { %454 = vmatpush1.msra.mxu1 %v156_v55  ;;  %384 = vmatprep.subr.mxu0 %v91_v56  ;;  %v205_v21 = vld [vmem:[#allocation5 + $0x3a8] sm:$0xff]  ;;  %v204_v23 = vld [vmem:[#allocation5 + $0x3a0] sm:$0xff]  ;;  %v139_v24 = vld [vmem:[#allocation5 + $0x198] sm:$0xff] }
  0x52   :  { %455 = vmatprep.subr.mxu1 %v155_v57  ;;  %385 = vmatpush1.msra.mxu0 %v90_v58  ;;  %v203_v25 = vld [vmem:[#allocation5 + $0x398] sm:$0xff]  ;;  %v138_v26 = vld [vmem:[#allocation5 + $0x190] sm:$0xff]  ;;  %v137_v28 = vld [vmem:[#allocation5 + $0x188] sm:$0xff] }
  0x53   :  { %456 = vmatpush1.msra.mxu1 %v154_v59  ;;  %386 = vmatprep.subr.mxu0 %v89_v60  ;;  %v202_v27 = vld [vmem:[#allocation5 + $0x390] sm:$0xff]  ;;  %v201_v29 = vld [vmem:[#allocation5 + $0x388] sm:$0xff]  ;;  %v136_v30 = vld [vmem:[#allocation5 + $0x180] sm:$0xff] }
  0x54   :  { %457 = vmatprep.subr.mxu1 %v153_v61  ;;  %387 = vmatpush1.msra.mxu0 %v88_v62  ;;  %v200_v31 = vld [vmem:[#allocation5 + $0x380] sm:$0xff]  ;;  %v135_v32 = vld [vmem:[#allocation5 + $0x178] sm:$0xff]  ;;  %v134_v34 = vld [vmem:[#allocation5 + $0x170] sm:$0xff] }
  0x55   :  { %458 = vmatpush1.msra.mxu1 %v152_v63  ;;  %388 = vmatprep.subr.mxu0 %v151_v0  ;;  %v199_v33 = vld [vmem:[#allocation5 + $0x378] sm:$0xff]  ;;  %v198_v35 = vld [vmem:[#allocation5 + $0x370] sm:$0xff]  ;;  %v133_v36 = vld [vmem:[#allocation5 + $0x168] sm:$0xff] }
  0x56   :  { %459 = vmatprep.subr.mxu1 %v215_v1  ;;  %389 = vmatpush2.msra.mxu0 %v150_v2  ;;  %v197_v37 = vld [vmem:[#allocation5 + $0x368] sm:$0xff]  ;;  %v132_v38 = vld [vmem:[#allocation5 + $0x160] sm:$0xff]  ;;  %v131_v40 = vld [vmem:[#allocation5 + $0x158] sm:$0xff] }
  0x57   :  { %460 = vmatpush2.msra.mxu1 %v214_v3  ;;  %390 = vmatprep.subr.mxu0 %v149_v4  ;;  %v196_v39 = vld [vmem:[#allocation5 + $0x360] sm:$0xff]  ;;  %v195_v41 = vld [vmem:[#allocation5 + $0x358] sm:$0xff]  ;;  %v130_v42 = vld [vmem:[#allocation5 + $0x150] sm:$0xff] }
  0x58   :  { %461 = vmatprep.subr.mxu1 %v213_v5  ;;  %391 = vmatpush2.msra.mxu0 %v148_v6  ;;  %v194_v43 = vld [vmem:[#allocation5 + $0x350] sm:$0xff]  ;;  %v129_v44 = vld [vmem:[#allocation5 + $0x148] sm:$0xff]  ;;  %v128_v46 = vld [vmem:[#allocation5 + $0x140] sm:$0xff] }
  0x59   :  { %462 = vmatpush2.msra.mxu1 %v212_v7  ;;  %392 = vmatprep.subr.mxu0 %v147_v8  ;;  %v193_v45 = vld [vmem:[#allocation5 + $0x348] sm:$0xff]  ;;  %v192_v47 = vld [vmem:[#allocation5 + $0x340] sm:$0xff]  ;;  %v127_v48 = vld [vmem:[#allocation5 + $0x138] sm:$0xff] }
  0x5a   :  { %463 = vmatprep.subr.mxu1 %v211_v9  ;;  %393 = vmatpush2.msra.mxu0 %v146_v10  ;;  %v191_v49 = vld [vmem:[#allocation5 + $0x338] sm:$0xff]  ;;  %v126_v50 = vld [vmem:[#allocation5 + $0x130] sm:$0xff]  ;;  %v125_v52 = vld [vmem:[#allocation5 + $0x128] sm:$0xff] }
  0x5b   :  { %464 = vmatpush2.msra.mxu1 %v210_v11  ;;  %394 = vmatprep.subr.mxu0 %v145_v12  ;;  %v190_v51 = vld [vmem:[#allocation5 + $0x330] sm:$0xff]  ;;  %v189_v53 = vld [vmem:[#allocation5 + $0x328] sm:$0xff]  ;;  %v124_v54 = vld [vmem:[#allocation5 + $0x120] sm:$0xff] }
  0x5c   :  { %465 = vmatprep.subr.mxu1 %v209_v13  ;;  %395 = vmatpush2.msra.mxu0 %v144_v14  ;;  %v188_v55 = vld [vmem:[#allocation5 + $0x320] sm:$0xff]  ;;  %v123_v56 = vld [vmem:[#allocation5 + $0x118] sm:$0xff]  ;;  %v122_v58 = vld [vmem:[#allocation5 + $0x110] sm:$0xff] }
  0x5d   :  { %466 = vmatpush2.msra.mxu1 %v208_v15  ;;  %396 = vmatprep.subr.mxu0 %v143_v16  ;;  %v187_v57 = vld [vmem:[#allocation5 + $0x318] sm:$0xff]  ;;  %v186_v59 = vld [vmem:[#allocation5 + $0x310] sm:$0xff]  ;;  %v121_v60 = vld [vmem:[#allocation5 + $0x108] sm:$0xff] }
  0x5e   :  { %467 = vmatprep.subr.mxu1 %v207_v17  ;;  %397 = vmatpush2.msra.mxu0 %v142_v18  ;;  %v185_v61 = vld [vmem:[#allocation5 + $0x308] sm:$0xff]  ;;  %v120_v62 = vld [vmem:[#allocation5 + $0x100] sm:$0xff]  ;;  %v83_v2 = vld [vmem:[#allocation2 + $0x18] sm:$0xff] }
  0x5f   :  { %468 = vmatpush2.msra.mxu1 %v206_v19  ;;  %398 = vmatprep.subr.mxu0 %v141_v20  ;;  %v81_v63 = vld [vmem:[#allocation2 + $0x8] sm:$0xff]  ;;  %v184_v0 = vld [vmem:[#allocation5 + $0x300] sm:$0xff]  ;;  %v247_v3 = vld [vmem:[#allocation5 + $0x4f8] sm:$0xff] }
  0x60   :  { %469 = vmatprep.subr.mxu1 %v205_v21  ;;  %399 = vmatpush2.msra.mxu0 %v140_v22  ;;  %v80_v1 = vld [vmem:[#allocation2] sm:$0xff]  ;;  %v311_v4 = vld [vmem:[#allocation5 + $0x6f8] sm:$0xff]  ;;  %v82_v5 = vld [vmem:[#allocation2 + $0x10] sm:$0xff] }
  0x61   :  { %470 = vmatpush2.msra.mxu1 %v204_v23  ;;  %400 = vmatprep.subr.mxu0 %v139_v24  ;;  %v246_v6 = vld [vmem:[#allocation5 + $0x4f0] sm:$0xff]  ;;  %v245_v8 = vld [vmem:[#allocation5 + $0x4e8] sm:$0xff]  ;;  %v244_v10 = vld [vmem:[#allocation5 + $0x4e0] sm:$0xff] }
  0x62   :  { %471 = vmatprep.subr.mxu1 %v203_v25  ;;  %401 = vmatpush2.msra.mxu0 %v138_v26  ;;  %v310_v7 = vld [vmem:[#allocation5 + $0x6f0] sm:$0xff]  ;;  %v309_v9 = vld [vmem:[#allocation5 + $0x6e8] sm:$0xff]  ;;  %v308_v11 = vld [vmem:[#allocation5 + $0x6e0] sm:$0xff] }
  0x63   :  { %472 = vmatpush2.msra.mxu1 %v202_v27  ;;  %402 = vmatprep.subr.mxu0 %v137_v28  ;;  %v243_v12 = vld [vmem:[#allocation5 + $0x4d8] sm:$0xff]  ;;  %v242_v14 = vld [vmem:[#allocation5 + $0x4d0] sm:$0xff]  ;;  %v241_v16 = vld [vmem:[#allocation5 + $0x4c8] sm:$0xff] }
  0x64   :  { %473 = vmatprep.subr.mxu1 %v201_v29  ;;  %403 = vmatpush2.msra.mxu0 %v136_v30  ;;  %v307_v13 = vld [vmem:[#allocation5 + $0x6d8] sm:$0xff]  ;;  %v306_v15 = vld [vmem:[#allocation5 + $0x6d0] sm:$0xff]  ;;  %v305_v17 = vld [vmem:[#allocation5 + $0x6c8] sm:$0xff] }
  0x65   :  { %474 = vmatpush2.msra.mxu1 %v200_v31  ;;  %404 = vmatprep.subr.mxu0 %v135_v32  ;;  %v240_v18 = vld [vmem:[#allocation5 + $0x4c0] sm:$0xff]  ;;  %v239_v20 = vld [vmem:[#allocation5 + $0x4b8] sm:$0xff]  ;;  %v238_v22 = vld [vmem:[#allocation5 + $0x4b0] sm:$0xff] }
  0x66   :  { %475 = vmatprep.subr.mxu1 %v199_v33  ;;  %405 = vmatpush2.msra.mxu0 %v134_v34  ;;  %v304_v19 = vld [vmem:[#allocation5 + $0x6c0] sm:$0xff]  ;;  %v303_v21 = vld [vmem:[#allocation5 + $0x6b8] sm:$0xff]  ;;  %v302_v23 = vld [vmem:[#allocation5 + $0x6b0] sm:$0xff] }
  0x67   :  { %476 = vmatpush2.msra.mxu1 %v198_v35  ;;  %406 = vmatprep.subr.mxu0 %v133_v36  ;;  %v237_v24 = vld [vmem:[#allocation5 + $0x4a8] sm:$0xff]  ;;  %v236_v26 = vld [vmem:[#allocation5 + $0x4a0] sm:$0xff]  ;;  %v235_v28 = vld [vmem:[#allocation5 + $0x498] sm:$0xff] }
  0x68   :  { %477 = vmatprep.subr.mxu1 %v197_v37  ;;  %407 = vmatpush2.msra.mxu0 %v132_v38  ;;  %v301_v25 = vld [vmem:[#allocation5 + $0x6a8] sm:$0xff]  ;;  %v300_v27 = vld [vmem:[#allocation5 + $0x6a0] sm:$0xff]  ;;  %v299_v29 = vld [vmem:[#allocation5 + $0x698] sm:$0xff] }
  0x69   :  { %478 = vmatpush2.msra.mxu1 %v196_v39  ;;  %408 = vmatprep.subr.mxu0 %v131_v40  ;;  %v234_v30 = vld [vmem:[#allocation5 + $0x490] sm:$0xff]  ;;  %v233_v32 = vld [vmem:[#allocation5 + $0x488] sm:$0xff]  ;;  %v232_v34 = vld [vmem:[#allocation5 + $0x480] sm:$0xff] }
  0x6a   :  { %479 = vmatprep.subr.mxu1 %v195_v41  ;;  %409 = vmatpush2.msra.mxu0 %v130_v42  ;;  %v298_v31 = vld [vmem:[#allocation5 + $0x690] sm:$0xff]  ;;  %v297_v33 = vld [vmem:[#allocation5 + $0x688] sm:$0xff]  ;;  %v296_v35 = vld [vmem:[#allocation5 + $0x680] sm:$0xff] }
  0x6b   :  { %480 = vmatpush2.msra.mxu1 %v194_v43  ;;  %410 = vmatprep.subr.mxu0 %v129_v44  ;;  %v231_v36 = vld [vmem:[#allocation5 + $0x478] sm:$0xff]  ;;  %v230_v38 = vld [vmem:[#allocation5 + $0x470] sm:$0xff]  ;;  %v229_v40 = vld [vmem:[#allocation5 + $0x468] sm:$0xff] }
  0x6c   :  { %481 = vmatprep.subr.mxu1 %v193_v45  ;;  %411 = vmatpush2.msra.mxu0 %v128_v46  ;;  %v295_v37 = vld [vmem:[#allocation5 + $0x678] sm:$0xff]  ;;  %v294_v39 = vld [vmem:[#allocation5 + $0x670] sm:$0xff]  ;;  %v293_v41 = vld [vmem:[#allocation5 + $0x668] sm:$0xff] }
  0x6d   :  { %482 = vmatpush2.msra.mxu1 %v192_v47  ;;  %412 = vmatprep.subr.mxu0 %v127_v48  ;;  %v228_v42 = vld [vmem:[#allocation5 + $0x460] sm:$0xff]  ;;  %v227_v44 = vld [vmem:[#allocation5 + $0x458] sm:$0xff]  ;;  %v226_v46 = vld [vmem:[#allocation5 + $0x450] sm:$0xff] }
  0x6e   :  { %483 = vmatprep.subr.mxu1 %v191_v49  ;;  %413 = vmatpush2.msra.mxu0 %v126_v50  ;;  %v292_v43 = vld [vmem:[#allocation5 + $0x660] sm:$0xff]  ;;  %v291_v45 = vld [vmem:[#allocation5 + $0x658] sm:$0xff]  ;;  %v290_v47 = vld [vmem:[#allocation5 + $0x650] sm:$0xff] }
  0x6f   :  { %484 = vmatpush2.msra.mxu1 %v190_v51  ;;  %414 = vmatprep.subr.mxu0 %v125_v52  ;;  %v225_v48 = vld [vmem:[#allocation5 + $0x448] sm:$0xff]  ;;  %v224_v50 = vld [vmem:[#allocation5 + $0x440] sm:$0xff]  ;;  %v223_v52 = vld [vmem:[#allocation5 + $0x438] sm:$0xff] }
  0x70   :  { %485 = vmatprep.subr.mxu1 %v189_v53  ;;  %415 = vmatpush2.msra.mxu0 %v124_v54  ;;  %v289_v49 = vld [vmem:[#allocation5 + $0x648] sm:$0xff]  ;;  %v288_v51 = vld [vmem:[#allocation5 + $0x640] sm:$0xff]  ;;  %v287_v53 = vld [vmem:[#allocation5 + $0x638] sm:$0xff] }
  0x71   :  { %486 = vmatpush2.msra.mxu1 %v188_v55  ;;  %416 = vmatprep.subr.mxu0 %v123_v56  ;;  %v222_v54 = vld [vmem:[#allocation5 + $0x430] sm:$0xff]  ;;  %v221_v56 = vld [vmem:[#allocation5 + $0x428] sm:$0xff] }
  0x72   :  { %487 = vmatprep.subr.mxu1 %v187_v57  ;;  %417 = vmatpush2.msra.mxu0 %v122_v58  ;;  %v286_v55 = vld [vmem:[#allocation5 + $0x630] sm:$0xff]  ;;  %v285_v57 = vld [vmem:[#allocation5 + $0x628] sm:$0xff]  ;;  %v220_v58 = vld [vmem:[#allocation5 + $0x420] sm:$0xff] }
  0x73   :  { %488 = vmatpush2.msra.mxu1 %v186_v59  ;;  %418 = vmatprep.subr.mxu0 %v121_v60  ;;  %v284_v59 = vld [vmem:[#allocation5 + $0x620] sm:$0xff]  ;;  %v219_v60 = vld [vmem:[#allocation5 + $0x418] sm:$0xff] }
  0x74   :  { %489 = vmatprep.subr.mxu1 %v185_v61  ;;  %419 = vmatpush2.msra.mxu0 %v120_v62  ;;  %v283_v61 = vld [vmem:[#allocation5 + $0x618] sm:$0xff]  ;;  %v218_v62 = vld [vmem:[#allocation5 + $0x410] sm:$0xff] }
  0x75   :  { %420 = vmatprep.mubr.f32.mxu0 %v81_v63  ;;  %490 = vmatpush2.msra.mxu1 %v184_v0  ;;  %v282_v63 = vld [vmem:[#allocation5 + $0x610] sm:$0xff]  ;;  %v217_v0 = vld [vmem:[#allocation5 + $0x408] sm:$0xff] }
  0x76   :  { %421 = vmatmul.mubr.f32.vlgmr.msra.gmra.mxu0 %v80_v1  ;;  %491 = vmatprep.mubr.f32.mxu1 %v83_v2  ;;  %v281_v1 = vld [vmem:[#allocation5 + $0x608] sm:$0xff]  ;;  %v216_v2 = vld [vmem:[#allocation5 + $0x400] sm:$0xff] }
  0x77   :  { %498 = vmatprep.subr.mxu0 %v247_v3  ;;  %569 = vmatprep.subr.mxu1 %v311_v4  ;;  %v280_v3 = vld [vmem:[#allocation5 + $0x600] sm:$0xff]  ;;  %v279_v4 = vld [vmem:[#allocation5 + $0x5f8] sm:$0xff] }
  0x78   :  { %492 = vmatmul.mubr.f32.vlgmr.msra.gmra.mxu1 %v82_v5  ;;  %499 = vmatpush1.msra.mxu0 %v246_v6  ;;  %v343_v5 = vld [vmem:[#allocation5 + $0x7f8] sm:$0xff]  ;;  %v278_v6 = vld [vmem:[#allocation5 + $0x5f0] sm:$0xff] }
  0x79   :  { %570 = vmatpush1.msra.mxu1 %v310_v7  ;;  %500 = vmatprep.subr.mxu0 %v245_v8  ;;  %v342_v7 = vld [vmem:[#allocation5 + $0x7f0] sm:$0xff]  ;;  %v277_v8 = vld [vmem:[#allocation5 + $0x5e8] sm:$0xff] }
  0x7a   :  { %571 = vmatprep.subr.mxu1 %v309_v9  ;;  %501 = vmatpush1.msra.mxu0 %v244_v10  ;;  %v341_v9 = vld [vmem:[#allocation5 + $0x7e8] sm:$0xff]  ;;  %v276_v10 = vld [vmem:[#allocation5 + $0x5e0] sm:$0xff] }
  0x7b   :  { %572 = vmatpush1.msra.mxu1 %v308_v11  ;;  %502 = vmatprep.subr.mxu0 %v243_v12  ;;  %v340_v11 = vld [vmem:[#allocation5 + $0x7e0] sm:$0xff]  ;;  %v275_v12 = vld [vmem:[#allocation5 + $0x5d8] sm:$0xff] }
  0x7c   :  { %573 = vmatprep.subr.mxu1 %v307_v13  ;;  %503 = vmatpush1.msra.mxu0 %v242_v14  ;;  %v339_v13 = vld [vmem:[#allocation5 + $0x7d8] sm:$0xff]  ;;  %v274_v14 = vld [vmem:[#allocation5 + $0x5d0] sm:$0xff] }
  0x7d   :  { %574 = vmatpush1.msra.mxu1 %v306_v15  ;;  %504 = vmatprep.subr.mxu0 %v241_v16  ;;  %v338_v15 = vld [vmem:[#allocation5 + $0x7d0] sm:$0xff]  ;;  %v273_v16 = vld [vmem:[#allocation5 + $0x5c8] sm:$0xff] }
  0x7e   :  { %575 = vmatprep.subr.mxu1 %v305_v17  ;;  %505 = vmatpush1.msra.mxu0 %v240_v18  ;;  %v337_v17 = vld [vmem:[#allocation5 + $0x7c8] sm:$0xff]  ;;  %v272_v18 = vld [vmem:[#allocation5 + $0x5c0] sm:$0xff] }
  0x7f   :  { %576 = vmatpush1.msra.mxu1 %v304_v19  ;;  %506 = vmatprep.subr.mxu0 %v239_v20  ;;  %v336_v19 = vld [vmem:[#allocation5 + $0x7c0] sm:$0xff]  ;;  %v271_v20 = vld [vmem:[#allocation5 + $0x5b8] sm:$0xff] }
  0x80   :  { %577 = vmatprep.subr.mxu1 %v303_v21  ;;  %507 = vmatpush1.msra.mxu0 %v238_v22  ;;  %v335_v21 = vld [vmem:[#allocation5 + $0x7b8] sm:$0xff]  ;;  %v270_v22 = vld [vmem:[#allocation5 + $0x5b0] sm:$0xff] }
  0x81   :  { %578 = vmatpush1.msra.mxu1 %v302_v23  ;;  %508 = vmatprep.subr.mxu0 %v237_v24  ;;  %v334_v23 = vld [vmem:[#allocation5 + $0x7b0] sm:$0xff]  ;;  %v269_v24 = vld [vmem:[#allocation5 + $0x5a8] sm:$0xff] }
  0x82   :  { %579 = vmatprep.subr.mxu1 %v301_v25  ;;  %509 = vmatpush1.msra.mxu0 %v236_v26  ;;  %v333_v25 = vld [vmem:[#allocation5 + $0x7a8] sm:$0xff]  ;;  %v268_v26 = vld [vmem:[#allocation5 + $0x5a0] sm:$0xff] }
  0x83   :  { %580 = vmatpush1.msra.mxu1 %v300_v27  ;;  %510 = vmatprep.subr.mxu0 %v235_v28  ;;  %v332_v27 = vld [vmem:[#allocation5 + $0x7a0] sm:$0xff]  ;;  %v267_v28 = vld [vmem:[#allocation5 + $0x598] sm:$0xff] }
  0x84   :  { %581 = vmatprep.subr.mxu1 %v299_v29  ;;  %511 = vmatpush1.msra.mxu0 %v234_v30  ;;  %v331_v29 = vld [vmem:[#allocation5 + $0x798] sm:$0xff]  ;;  %v266_v30 = vld [vmem:[#allocation5 + $0x590] sm:$0xff] }
  0x85   :  { %582 = vmatpush1.msra.mxu1 %v298_v31  ;;  %512 = vmatprep.subr.mxu0 %v233_v32  ;;  %v330_v31 = vld [vmem:[#allocation5 + $0x790] sm:$0xff]  ;;  %v265_v32 = vld [vmem:[#allocation5 + $0x588] sm:$0xff] }
  0x86   :  { %583 = vmatprep.subr.mxu1 %v297_v33  ;;  %513 = vmatpush1.msra.mxu0 %v232_v34  ;;  %v329_v33 = vld [vmem:[#allocation5 + $0x788] sm:$0xff]  ;;  %v264_v34 = vld [vmem:[#allocation5 + $0x580] sm:$0xff] }
  0x87   :  { %584 = vmatpush1.msra.mxu1 %v296_v35  ;;  %514 = vmatprep.subr.mxu0 %v231_v36  ;;  %v328_v35 = vld [vmem:[#allocation5 + $0x780] sm:$0xff]  ;;  %v263_v36 = vld [vmem:[#allocation5 + $0x578] sm:$0xff] }
  0x88   :  { %585 = vmatprep.subr.mxu1 %v295_v37  ;;  %515 = vmatpush1.msra.mxu0 %v230_v38  ;;  %v327_v37 = vld [vmem:[#allocation5 + $0x778] sm:$0xff]  ;;  %v262_v38 = vld [vmem:[#allocation5 + $0x570] sm:$0xff] }
  0x89   :  { %586 = vmatpush1.msra.mxu1 %v294_v39  ;;  %516 = vmatprep.subr.mxu0 %v229_v40  ;;  %v326_v39 = vld [vmem:[#allocation5 + $0x770] sm:$0xff]  ;;  %v261_v40 = vld [vmem:[#allocation5 + $0x568] sm:$0xff] }
  0x8a   :  { %587 = vmatprep.subr.mxu1 %v293_v41  ;;  %517 = vmatpush1.msra.mxu0 %v228_v42  ;;  %v325_v41 = vld [vmem:[#allocation5 + $0x768] sm:$0xff]  ;;  %v260_v42 = vld [vmem:[#allocation5 + $0x560] sm:$0xff] }
  0x8b   :  { %588 = vmatpush1.msra.mxu1 %v292_v43  ;;  %518 = vmatprep.subr.mxu0 %v227_v44  ;;  %v324_v43 = vld [vmem:[#allocation5 + $0x760] sm:$0xff]  ;;  %v259_v44 = vld [vmem:[#allocation5 + $0x558] sm:$0xff] }
  0x8c   :  { %589 = vmatprep.subr.mxu1 %v291_v45  ;;  %519 = vmatpush1.msra.mxu0 %v226_v46  ;;  %v323_v45 = vld [vmem:[#allocation5 + $0x758] sm:$0xff]  ;;  %v258_v46 = vld [vmem:[#allocation5 + $0x550] sm:$0xff] }
  0x8d   :  { %590 = vmatpush1.msra.mxu1 %v290_v47  ;;  %520 = vmatprep.subr.mxu0 %v225_v48  ;;  %v322_v47 = vld [vmem:[#allocation5 + $0x750] sm:$0xff]  ;;  %v257_v48 = vld [vmem:[#allocation5 + $0x548] sm:$0xff] }
  0x8e   :  { %591 = vmatprep.subr.mxu1 %v289_v49  ;;  %521 = vmatpush1.msra.mxu0 %v224_v50  ;;  %v321_v49 = vld [vmem:[#allocation5 + $0x748] sm:$0xff]  ;;  %v256_v50 = vld [vmem:[#allocation5 + $0x540] sm:$0xff] }
  0x8f   :  { %592 = vmatpush1.msra.mxu1 %v288_v51  ;;  %522 = vmatprep.subr.mxu0 %v223_v52  ;;  %v320_v51 = vld [vmem:[#allocation5 + $0x740] sm:$0xff]  ;;  %v255_v52 = vld [vmem:[#allocation5 + $0x538] sm:$0xff] }
  0x90   :  { %593 = vmatprep.subr.mxu1 %v287_v53  ;;  %523 = vmatpush1.msra.mxu0 %v222_v54  ;;  %v319_v53 = vld [vmem:[#allocation5 + $0x738] sm:$0xff]  ;;  %v254_v54 = vld [vmem:[#allocation5 + $0x530] sm:$0xff] }
  0x91   :  { %594 = vmatpush1.msra.mxu1 %v286_v55  ;;  %524 = vmatprep.subr.mxu0 %v221_v56  ;;  %v318_v55 = vld [vmem:[#allocation5 + $0x730] sm:$0xff]  ;;  %v253_v56 = vld [vmem:[#allocation5 + $0x528] sm:$0xff] }
  0x92   :  { %595 = vmatprep.subr.mxu1 %v285_v57  ;;  %525 = vmatpush1.msra.mxu0 %v220_v58  ;;  %v317_v57 = vld [vmem:[#allocation5 + $0x728] sm:$0xff]  ;;  %v252_v58 = vld [vmem:[#allocation5 + $0x520] sm:$0xff] }
  0x93   :  { %596 = vmatpush1.msra.mxu1 %v284_v59  ;;  %526 = vmatprep.subr.mxu0 %v219_v60  ;;  %v316_v59 = vld [vmem:[#allocation5 + $0x720] sm:$0xff]  ;;  %v251_v60 = vld [vmem:[#allocation5 + $0x518] sm:$0xff] }
  0x94   :  { %597 = vmatprep.subr.mxu1 %v283_v61  ;;  %527 = vmatpush1.msra.mxu0 %v218_v62  ;;  %v315_v61 = vld [vmem:[#allocation5 + $0x718] sm:$0xff]  ;;  %v250_v62 = vld [vmem:[#allocation5 + $0x510] sm:$0xff] }
  0x95   :  { %598 = vmatpush1.msra.mxu1 %v282_v63  ;;  %528 = vmatprep.subr.mxu0 %v217_v0  ;;  %v314_v63 = vld [vmem:[#allocation5 + $0x710] sm:$0xff]  ;;  %v249_v0 = vld [vmem:[#allocation5 + $0x508] sm:$0xff] }
  0x96   :  { %599 = vmatprep.subr.mxu1 %v281_v1  ;;  %529 = vmatpush1.msra.mxu0 %v216_v2  ;;  %v313_v1 = vld [vmem:[#allocation5 + $0x708] sm:$0xff]  ;;  %v248_v2 = vld [vmem:[#allocation5 + $0x500] sm:$0xff] }
  0x97   :  { %600 = vmatpush1.msra.mxu1 %v280_v3  ;;  %530 = vmatprep.subr.mxu0 %v279_v4  ;;  %v85_v3 = vld [vmem:[#allocation2 + $0x28] sm:$0xff]  ;;  %v312_v4 = vld [vmem:[#allocation5 + $0x700] sm:$0xff] }
  0x98   :  { %601 = vmatprep.subr.mxu1 %v343_v5  ;;  %531 = vmatpush2.msra.mxu0 %v278_v6  ;;  %v87_v5 = vld [vmem:[#allocation2 + $0x38] sm:$0xff]  ;;  %v84_v6 = vld [vmem:[#allocation2 + $0x20] sm:$0xff] }
  0x99   :  { %602 = vmatpush2.msra.mxu1 %v342_v7  ;;  %532 = vmatprep.subr.mxu0 %v277_v8  ;;  %v86_v7 = vld [vmem:[#allocation2 + $0x30] sm:$0xff]  ;;  %v673_v8 = vld [vmem:[#allocation7 + $0xf8] sm:$0xff] }
  0x9a   :  { %603 = vmatprep.subr.mxu1 %v341_v9  ;;  %533 = vmatpush2.msra.mxu0 %v276_v10  ;;  %v657_v9 = vld [vmem:[#allocation7 + $0x78] sm:$0xff]  ;;  %v672_v10 = vld [vmem:[#allocation7 + $0xf0] sm:$0xff] }
  0x9b   :  { %604 = vmatpush2.msra.mxu1 %v340_v11  ;;  %534 = vmatprep.subr.mxu0 %v275_v12  ;;  %v656_v11 = vld [vmem:[#allocation7 + $0x70] sm:$0xff]  ;;  %v671_v12 = vld [vmem:[#allocation7 + $0xe8] sm:$0xff] }
  0x9c   :  { %605 = vmatprep.subr.mxu1 %v339_v13  ;;  %535 = vmatpush2.msra.mxu0 %v274_v14  ;;  %v655_v13 = vld [vmem:[#allocation7 + $0x68] sm:$0xff]  ;;  %v670_v14 = vld [vmem:[#allocation7 + $0xe0] sm:$0xff] }
  0x9d   :  { %606 = vmatpush2.msra.mxu1 %v338_v15  ;;  %536 = vmatprep.subr.mxu0 %v273_v16  ;;  %v654_v15 = vld [vmem:[#allocation7 + $0x60] sm:$0xff]  ;;  %v669_v16 = vld [vmem:[#allocation7 + $0xd8] sm:$0xff] }
  0x9e   :  { %607 = vmatprep.subr.mxu1 %v337_v17  ;;  %537 = vmatpush2.msra.mxu0 %v272_v18  ;;  %v653_v17 = vld [vmem:[#allocation7 + $0x58] sm:$0xff]  ;;  %v668_v18 = vld [vmem:[#allocation7 + $0xd0] sm:$0xff] }
  0x9f   :  { %608 = vmatpush2.msra.mxu1 %v336_v19  ;;  %538 = vmatprep.subr.mxu0 %v271_v20  ;;  %v652_v19 = vld [vmem:[#allocation7 + $0x50] sm:$0xff]  ;;  %v667_v20 = vld [vmem:[#allocation7 + $0xc8] sm:$0xff] }
  0xa0   :  { %609 = vmatprep.subr.mxu1 %v335_v21  ;;  %539 = vmatpush2.msra.mxu0 %v270_v22  ;;  %v651_v21 = vld [vmem:[#allocation7 + $0x48] sm:$0xff]  ;;  %v666_v22 = vld [vmem:[#allocation7 + $0xc0] sm:$0xff] }
  0xa1   :  { %610 = vmatpush2.msra.mxu1 %v334_v23  ;;  %540 = vmatprep.subr.mxu0 %v269_v24  ;;  %v650_v23 = vld [vmem:[#allocation7 + $0x40] sm:$0xff]  ;;  %v665_v24 = vld [vmem:[#allocation7 + $0xb8] sm:$0xff] }
  0xa2   :  { %611 = vmatprep.subr.mxu1 %v333_v25  ;;  %541 = vmatpush2.msra.mxu0 %v268_v26  ;;  %v649_v25 = vld [vmem:[#allocation7 + $0x38] sm:$0xff]  ;;  %v664_v26 = vld [vmem:[#allocation7 + $0xb0] sm:$0xff] }
  0xa3   :  { %612 = vmatpush2.msra.mxu1 %v332_v27  ;;  %542 = vmatprep.subr.mxu0 %v267_v28  ;;  %v648_v27 = vld [vmem:[#allocation7 + $0x30] sm:$0xff]  ;;  %v663_v28 = vld [vmem:[#allocation7 + $0xa8] sm:$0xff] }
  0xa4   :  { %613 = vmatprep.subr.mxu1 %v331_v29  ;;  %543 = vmatpush2.msra.mxu0 %v266_v30  ;;  %v647_v29 = vld [vmem:[#allocation7 + $0x28] sm:$0xff]  ;;  %v662_v30 = vld [vmem:[#allocation7 + $0xa0] sm:$0xff] }
  0xa5   :  { %614 = vmatpush2.msra.mxu1 %v330_v31  ;;  %544 = vmatprep.subr.mxu0 %v265_v32  ;;  %v646_v31 = vld [vmem:[#allocation7 + $0x20] sm:$0xff]  ;;  %v661_v32 = vld [vmem:[#allocation7 + $0x98] sm:$0xff] }
  0xa6   :  { %615 = vmatprep.subr.mxu1 %v329_v33  ;;  %545 = vmatpush2.msra.mxu0 %v264_v34  ;;  %v645_v33 = vld [vmem:[#allocation7 + $0x18] sm:$0xff]  ;;  %v660_v34 = vld [vmem:[#allocation7 + $0x90] sm:$0xff] }
  0xa7   :  { %616 = vmatpush2.msra.mxu1 %v328_v35  ;;  %546 = vmatprep.subr.mxu0 %v263_v36  ;;  %v644_v35 = vld [vmem:[#allocation7 + $0x10] sm:$0xff]  ;;  %v659_v36 = vld [vmem:[#allocation7 + $0x88] sm:$0xff] }
  0xa8   :  { %617 = vmatprep.subr.mxu1 %v327_v37  ;;  %547 = vmatpush2.msra.mxu0 %v262_v38  ;;  %v643_v37 = vld [vmem:[#allocation7 + $0x8] sm:$0xff]  ;;  %v658_v38 = vld [vmem:[#allocation7 + $0x80] sm:$0xff] }
  0xa9   :  { %618 = vmatpush2.msra.mxu1 %v326_v39  ;;  %548 = vmatprep.subr.mxu0 %v261_v40  ;;  %v642_v39 = vld [vmem:[#allocation7] sm:$0xff]  ;;  %v767_v40 = vld [vmem:[#allocation8 + $0x78] sm:$0xff] }
  0xaa   :  { %619 = vmatprep.subr.mxu1 %v325_v41  ;;  %549 = vmatpush2.msra.mxu0 %v260_v42  ;;  %v1079_v41 = vmov 0.0   ;;  %v766_v42 = vld [vmem:[#allocation8 + $0x70] sm:$0xff] }
  0xab   :  { %620 = vmatpush2.msra.mxu1 %v324_v43  ;;  %550 = vmatprep.subr.mxu0 %v259_v44  ;;  %v765_v43 = vld [vmem:[#allocation8 + $0x68] sm:$0xff]  ;;  %v764_v44 = vld [vmem:[#allocation8 + $0x60] sm:$0xff] }
  0xac   :  { %621 = vmatprep.subr.mxu1 %v323_v45  ;;  %551 = vmatpush2.msra.mxu0 %v258_v46  ;;  %v763_v45 = vld [vmem:[#allocation8 + $0x58] sm:$0xff]  ;;  %v762_v46 = vld [vmem:[#allocation8 + $0x50] sm:$0xff] }
  0xad   :  { %622 = vmatpush2.msra.mxu1 %v322_v47  ;;  %552 = vmatprep.subr.mxu0 %v257_v48  ;;  %v761_v47 = vld [vmem:[#allocation8 + $0x48] sm:$0xff]  ;;  %v760_v48 = vld [vmem:[#allocation8 + $0x40] sm:$0xff] }
  0xae   :  { %623 = vmatprep.subr.mxu1 %v321_v49  ;;  %553 = vmatpush2.msra.mxu0 %v256_v50  ;;  %v759_v49 = vld [vmem:[#allocation8 + $0x38] sm:$0xff]  ;;  %v758_v50 = vld [vmem:[#allocation8 + $0x30] sm:$0xff] }
  0xaf   :  { %624 = vmatpush2.msra.mxu1 %v320_v51  ;;  %554 = vmatprep.subr.mxu0 %v255_v52  ;;  %v757_v51 = vld [vmem:[#allocation8 + $0x28] sm:$0xff]  ;;  %v346_v52 = vlaneseq }
  0xb0   :  { %625 = vmatprep.subr.mxu1 %v319_v53  ;;  %555 = vmatpush2.msra.mxu0 %v254_v54 }
  0xb1   :  { %626 = vmatpush2.msra.mxu1 %v318_v55  ;;  %556 = vmatprep.subr.mxu0 %v253_v56  ;;  %v347_v53 = vshrl.u32 %v346_v52, 7  ;;  %v344_v55 = vld [vmem:[%s1165_s2] sm:$0x3] }
  0xb2   :  { %627 = vmatprep.subr.mxu1 %v317_v57  ;;  %557 = vmatpush2.msra.mxu0 %v252_v58 }
  0xb3   :  { %628 = vmatpush2.msra.mxu1 %v316_v59  ;;  %558 = vmatprep.subr.mxu0 %v251_v60  ;;  %v348_v54 = vsub.s32 0, %v347_v53  ;;  %v352_v56 = vsub.s32 1, %v347_v53 }
  0xb4   :  { %629 = vmatprep.subr.mxu1 %v315_v61  ;;  %559 = vmatpush2.msra.mxu0 %v250_v62 }
  0xb5   :  { %630 = vmatpush2.msra.mxu1 %v314_v63  ;;  %560 = vmatprep.subr.mxu0 %v249_v0  ;;  %v349_v58 = vrot.slane %v344_v55, %v348_v54  ;;  %v353_v59 = vrot.slane %v344_v55, %v352_v56 }
  0xb6   :  { %631 = vmatprep.subr.mxu1 %v313_v1  ;;  %561 = vmatpush2.msra.mxu0 %v248_v2 }
  0xb7   :  { %562 = vmatprep.mubr.f32.mxu0 %v85_v3  ;;  %632 = vmatpush2.msra.mxu1 %v312_v4 }
  0xb8   :  { %633 = vmatprep.mubr.f32.mxu1 %v87_v5  ;;  %563 = vmatmul.mubr.f32.vlgmr.msra.gmra.mxu0 %v84_v6 }
  0xb9   :  { %634 = vmatmul.mubr.f32.vlgmr.msra.gmra.mxu1 %v86_v7  ;;  %865 = vmatprep.subr.mxu0 %v673_v8 }
  0xba   :  { %866 = vmatpush3.msra.mxu0 %v657_v9  ;;  %917 = vmatprep.subr.mxu1 %v1079_v41 }
  0xbb   :  { %867 = vmatprep.subr.mxu0 %v672_v10  ;;  %918 = vmatpush3.msra.mxu1 %v767_v40 }
  0xbc   :  { %868 = vmatpush3.msra.mxu0 %v656_v11  ;;  %919 = vmatprep.subr.mxu1 %v1079_v41 }
  0xbd   :  { %869 = vmatprep.subr.mxu0 %v671_v12  ;;  %920 = vmatpush3.msra.mxu1 %v766_v42 }
  0xbe   :  { %870 = vmatpush3.msra.mxu0 %v655_v13  ;;  %921 = vmatprep.subr.mxu1 %v1079_v41  ;;  %v756_v13 = vld [vmem:[#allocation8 + $0x20] sm:$0xff] }
  0xbf   :  { %871 = vmatprep.subr.mxu0 %v670_v14  ;;  %922 = vmatpush3.msra.mxu1 %v765_v43  ;;  %v755_v14 = vld [vmem:[#allocation8 + $0x18] sm:$0xff] }
  0xc0   :  { %872 = vmatpush3.msra.mxu0 %v654_v15  ;;  %923 = vmatprep.subr.mxu1 %v1079_v41  ;;  %v754_v15 = vld [vmem:[#allocation8 + $0x10] sm:$0xff] }
  0xc1   :  { %873 = vmatprep.subr.mxu0 %v669_v16  ;;  %924 = vmatpush3.msra.mxu1 %v764_v44  ;;  %v753_v16 = vld [vmem:[#allocation8 + $0x8] sm:$0xff] }
  0xc2   :  { %874 = vmatpush3.msra.mxu0 %v653_v17  ;;  %925 = vmatprep.subr.mxu1 %v1079_v41  ;;  %v752_v17 = vld [vmem:[#allocation8] sm:$0xff] }
  0xc3   :  { %875 = vmatprep.subr.mxu0 %v668_v18  ;;  %926 = vmatpush3.msra.mxu1 %v763_v45 }
  0xc4   :  { %876 = vmatpush3.msra.mxu0 %v652_v19  ;;  %927 = vmatprep.subr.mxu1 %v1079_v41  ;;  %v863_v19 = vld [vmem:[%s1167_s4] ss:$0 sm:$0xff] }
  0xc5   :  { %877 = vmatprep.subr.mxu0 %v667_v20  ;;  %928 = vmatpush3.msra.mxu1 %v762_v46 }
  0xc6   :  { %878 = vmatpush3.msra.mxu0 %v651_v21  ;;  %929 = vmatprep.subr.mxu1 %v1079_v41 }
  0xc7   :  { %879 = vmatprep.subr.mxu0 %v666_v22  ;;  %930 = vmatpush3.msra.mxu1 %v761_v47 }
  0xc8   :  { %880 = vmatpush3.msra.mxu0 %v650_v23  ;;  %931 = vmatprep.subr.mxu1 %v1079_v41 }
  0xc9   :  { %881 = vmatprep.subr.mxu0 %v665_v24  ;;  %932 = vmatpush3.msra.mxu1 %v760_v48  ;;  %v864_v24 = vld [vmem:[%s1169_s6] ss:$0 sm:$0xff] }
  0xca   :  { %882 = vmatpush3.msra.mxu0 %v649_v25  ;;  %933 = vmatprep.subr.mxu1 %v1079_v41 }
  0xcb   :  { %883 = vmatprep.subr.mxu0 %v664_v26  ;;  %934 = vmatpush3.msra.mxu1 %v759_v49 }
  0xcc   :  { %884 = vmatpush3.msra.mxu0 %v648_v27  ;;  %935 = vmatprep.subr.mxu1 %v1079_v41 }
  0xcd   :  { %885 = vmatprep.subr.mxu0 %v663_v28  ;;  %936 = vmatpush3.msra.mxu1 %v758_v50 }
  0xce   :  { %886 = vmatpush3.msra.mxu0 %v647_v29  ;;  %937 = vmatprep.subr.mxu1 %v1079_v41 }
  0xcf   :  { %887 = vmatprep.subr.mxu0 %v662_v30  ;;  %938 = vmatpush3.msra.mxu1 %v757_v51 }
  0xd0   :  { %888 = vmatpush3.msra.mxu0 %v646_v31  ;;  %939 = vmatprep.subr.mxu1 %v1079_v41 }
  0xd1   :  { %889 = vmatprep.subr.mxu0 %v661_v32  ;;  %940 = vmatpush3.msra.mxu1 %v756_v13 }
  0xd2   :  { %890 = vmatpush3.msra.mxu0 %v645_v33  ;;  %941 = vmatprep.subr.mxu1 %v1079_v41 }
  0xd3   :  { %891 = vmatprep.subr.mxu0 %v660_v34  ;;  %942 = vmatpush3.msra.mxu1 %v755_v14 }
  0xd4   :  { %892 = vmatpush3.msra.mxu0 %v644_v35  ;;  %943 = vmatprep.subr.mxu1 %v1079_v41 }
  0xd5   :  { %893 = vmatprep.subr.mxu0 %v659_v36  ;;  %944 = vmatpush3.msra.mxu1 %v754_v15 }
  0xd6   :  { %894 = vmatpush3.msra.mxu0 %v643_v37  ;;  %945 = vmatprep.subr.mxu1 %v1079_v41 }
  0xd7   :  { %895 = vmatprep.subr.mxu0 %v658_v38  ;;  %946 = vmatpush3.msra.mxu1 %v753_v16 }
  0xd8   :  { %896 = vmatpush3.msra.mxu0 %v642_v39  ;;  %947 = vmatprep.subr.mxu1 %v1079_v41 }
  0xd9   :  { %948 = vmatpush3.msra.mxu1 %v752_v17  ;;  %949 = vmatprep.mubr.msk.f32.mxu1 %vm1080_vm0, %v1079_v41 }
 0x136   :  { %v422_v57 = vpop.f32.mrf.mxu0 }
 0x137   :  { %v423_v62 = vadd.f32 %v422_v57, %v349_v58 }
 0x138   :  { %v493_v60 = vpop.f32.mrf.mxu1  ;;  %v424_v61 = vpop.f32.mrf.mxu0 }
 0x139   :  { %v425_v63 = vadd.f32 %v424_v61, %v353_v59  ;;  %v494_v1 = vadd.f32 %v493_v60, %v423_v62 }
 0x13a   :  { %v495_v0 = vpop.f32.mrf.mxu1 }
 0x13b   :  { %v496_v4 = vadd.f32 %v495_v0, %v425_v63 }
 0x178   :  { %v564_v2 = vpop.f32.mrf.mxu0 }
 0x179   :  { %v635_v3 = vpop.f32.mrf.mxu1  ;;  %v565_v5 = vadd.f32 %v564_v2, %v494_v1 }
 0x17a   :  { %v566_v6 = vpop.f32.mrf.mxu0 }
 0x17b   :  { %v567_v7 = vadd.f32 %v566_v6, %v496_v4  ;;  %v636_v8 = vadd.f32 %v635_v3, %v565_v5  ;;  %v637_v9 = vpop.f32.mrf.mxu1 }
 0x17d   :  { %v638_v10 = vadd.f32 %v637_v9, %v567_v7  ;;  %v640_v12 = vmax.f32 %v636_v8, 0.0 }
 0x17f   :  { %v641_v11 = vmax.f32 %v638_v10, 0.0 }
 0x181   :  { %745 = vmatprep.mubr.f32.mxu0 %v641_v11 }
 0x182   :  { %746 = vmatmul.mubr.f32.vlgmr.msra.gmra.mxu0 %v640_v12 }
 0x242   :  { %v897_v18 = vpop.f32.mrf.mxu0 }
 0x244   :  { %v898_v20 = vpop.f32.mrf.mxu0 }
 0x245   :  { %v899_v21 = vadd.f32 %v898_v20, %v897_v18 }
 0x247   :  { %v748_v22 = vadd.f32 %v899_v21, %v863_v19 }
 0x249   :  { %v751_v23 = vmax.f32 %v748_v22, 0.0 }
 0x24b   :  { %950 = vmatmul.mubr.f32.vlgmr.msra.gmra.mxu1 %v751_v23 }
 0x30b   :  { %v841_v25 = vpop.f32.mrf.mxu1 }
 0x30c   :  { %v842_v26 = vadd.f32 %v864_v24, %v841_v25 }
 0x30d   :  { %v951_v27 = vpop.f32.mrf.mxu1 }
 0x30e   :  { %845 = vst [vmem:[#allocation10] sm:$0xff] %v842_v26 }
 0x30f   :  { %1054 = shalt.err (!%p1051_p10)
}
 0x310   :  { %855 = dma.vmem_to_hbm [thread:$0]  %s853_s27, 128, %s1170_s7, [#allocation4]  }
 0x311   :  { %1069 = dma.done.wait [#allocation4], 128  }
 0x312   :  { %1070 = vsyncadd [#allocation4], 4294967168 }
 0x313   :  { %859 = vsyncpa [#allocation3], 1 }
 0x314   :  { %860 = vsyncpa [#allocation6], 1 }
 0x315   :  { %861 = vsyncpa [#allocation9], 1 }
 0x316   :  { %862 = vsyncpa [#allocation4], 1 }

</bundles_post_ra>
